<compile_context>
chip_gen: v7x
topology: tpu7x:2x2x1
jax: 0.10.0
libtpu: 0.0.40
codegen_flags: <defaults>
</compile_context>

<pallas_src>
import functools
import math

import jax
import jax.numpy as jnp
from jax import lax
from jax.experimental import pallas as pl
from jax.experimental.pallas import tpu as pltpu

_SQRT_2 = math.sqrt(2.0)
_F32_BYTES = 4


def _gelu(x, approximate=False):
    # torch.nn.GELU() default is the exact erf formulation.
    if approximate:
        # tanh approximation runs on the EUP slot; only worth it if VALU-bound.
        return jax.nn.gelu(x, approximate=True)
    return 0.5 * x * (1.0 + lax.erf(x / _SQRT_2))


def _round_up(a, b):
    return (a + b - 1) // b * b


def _round_down(a, b):
    return (a // b) * b


# --------------------------------- kernels ----------------------------------


def _mlp_resident_kernel(x_ref, w1_ref, b1_ref, w2_ref, b2_ref, o_ref, *,
                         approximate):
    """Both (pre-transposed) weights VMEM-resident; one token tile per step."""
    x = x_ref[...]                                    # native dtype into the MXU
    h = jnp.dot(x, w1_ref[...], preferred_element_type=jnp.float32)
    h = h + b1_ref[...].astype(jnp.float32)
    h = _gelu(h, approximate)
    h = h.astype(w2_ref.dtype)                        # keep MXU at native rate
    y = jnp.dot(h, w2_ref[...], preferred_element_type=jnp.float32)
    y = y + b2_ref[...].astype(jnp.float32)
    # Dropout(p=0.0) is the identity -> omitted.
    o_ref[...] = y.astype(o_ref.dtype)


def _mlp_stream_kernel(x_ref, w1_ref, b1_ref, w2_ref, b2_ref, o_ref, acc_ref, *,
                       approximate):
    """Hidden-dim tiled variant: weight tiles streamed (double-buffered),
    fc1 bias+GELU fused per hidden tile and immediately accumulated into fc2,
    so neither the full weights nor the full (tm, H) intermediate reside in
    VMEM at once."""
    k = pl.program_id(1)

    @pl.when(k == 0)
    def _():
        acc_ref[...] = jnp.zeros_like(acc_ref)

    h = jnp.dot(x_ref[...], w1_ref[...], preferred_element_type=jnp.float32)
    h = h + b1_ref[...].astype(jnp.float32)
    h = _gelu(h, approximate).astype(w2_ref.dtype)
    acc_ref[...] += jnp.dot(h, w2_ref[...], preferred_element_type=jnp.float32)

    @pl.when(k == pl.num_programs(1) - 1)
    def _():
        y = acc_ref[...] + b2_ref[...].astype(jnp.float32)
        o_ref[...] = y.astype(o_ref.dtype)


# ------------------------------- tile planning ------------------------------


def _vmem_limit_bytes():
    """Generation-aware VMEM budget with headroom for compiler scratch/DMA."""
    cap = 64 * 1024 * 1024            # conservative fallback = v7x per-TC VMEM
    try:
        cap = int(pltpu.get_tpu_info().vmem_capacity_bytes)
    except Exception:                 # query unavailable -> keep fallback
        pass
    # ~80%: ~51 MiB on v7x (64 MiB/TC), ~102 MiB on v5e/v6e (128 MiB).
    return max(int(cap * 0.80), 32 * 1024 * 1024)


def _align_tm(tm, M):
    tm = max(int(tm), 8)
    tm = min(tm, _round_up(M, 8))
    if tm >= 256:
        tm = _round_down(tm, 256)     # MXU is 256-wide on v6e/v7x
    else:
        tm = _round_down(tm, 8)
    return max(tm, 8)


def _choose_hidden_tile(H, cap=512):
    """Largest multiple of 128 that divides H (<= cap); else the full H.
    (Exact division keeps partial-reduction garbage out of the accumulator.)"""
    if H % 128 != 0:
        return H
    best, d = 128, 128
    while d <= min(H, cap):
        if H % d == 0:
            best = d
        d += 128
    return best


def _plan(M, Din, H, Dout, x_bytes, w_elt_bytes, budget):
    """Pick (mode, tm, th) so everything fits in `budget` VMEM bytes."""
    # Resident plan: single-buffered weights + double-buffered x/out tiles +
    # f32 intermediates (h and pre-cast y).
    w_res = (Din * H + H * Dout) * w_elt_bytes + (H + Dout) * _F32_BYTES
    per_row_res = (2 * Din + 2 * Dout) * x_bytes + (H + Dout) * _F32_BYTES
    tm_res = 0
    if budget > w_res:
        tm_res = _align_tm((budget - w_res) // per_row_res, M)
    if budget > w_res and tm_res >= min(256, _round_up(M, 8)):
        return "resident", tm_res, H

    # Streaming plan: weight tiles double-buffered along the hidden dim.
    th = _choose_hidden_tile(H)
    w_str = (2 * (Din * th + th * Dout) * w_elt_bytes
             + (2 * th + Dout) * _F32_BYTES)
    per_row_str = ((2 * Din + 2 * Dout) * x_bytes
                   + Dout * _F32_BYTES + th * _F32_BYTES)
    tm_str = _align_tm(max((budget - w_str) // per_row_str, 8), M)
    # TODO(synk): if even one streamed tile overflows VMEM (enormous Din/Dout),
    # an additional output-feature (N) tiling level would be needed.
    return "stream", tm_str, th


def _ensure_two_steps(tm, M):
    """v7x megacore shards the 'parallel' axis across 2 TCs; keep >= 2 steps
    whenever the data allows it (harmless on v5e/v6e)."""
    if pl.cdiv(M, tm) >= 2 or tm <= 8:
        return tm
    tm_half = _round_up((tm + 1) // 2, 8)
    if pl.cdiv(M, tm_half) >= 2:
        return tm_half
    return tm


# --------------------------------- wrapper ----------------------------------


def mlp_pallas(x, w1, b1, w2, b2, *, force_mode=None, force_hidden_tile=None,
               gelu_approximate=False):
    """Forward pass of the PyTorch Mlp module.

    x: (..., Din). PyTorch layouts: w1 (H, Din), b1 (H,), w2 (Dout, H),
    b2 (Dout,). Dropout(p=0.0) is the identity.
    """
    *lead, Din = x.shape
    H, Din_w = w1.shape
    Dout, H_w = w2.shape
    assert Din_w == Din and H_w == H
    assert b1.shape == (H,) and b2.shape == (Dout,)

    M = int(math.prod(lead))
    x2d = x.reshape(M, Din)

    # One-time wrapper-side transposes (amortized over all grid steps) so the
    # kernel contracts with a plain jnp.dot and never emits a weight transpose.
    w1t = jnp.transpose(w1)            # (Din, H)
    w2t = jnp.transpose(w2)            # (H, Dout)
    b1r = b1.reshape(1, H)
    b2r = b2.reshape(1, Dout)

    vmem_limit = _vmem_limit_bytes()
    mode, tm, th = _plan(M, Din, H, Dout, x.dtype.itemsize,
                         w1.dtype.itemsize, int(vmem_limit * 0.9))
    if force_mode is not None:
        mode = force_mode
    if force_hidden_tile is not None:
        th = int(force_hidden_tile)
    assert H % th == 0, "hidden tile must divide the hidden dimension"
    tm = _ensure_two_steps(tm, M)

    out_dtype = x.dtype
    num_m = pl.cdiv(M, tm)
    kernel_kwargs = dict(approximate=gelu_approximate)

    cost = pl.CostEstimate(
        flops=2 * M * H * (Din + Dout),
        transcendentals=M * H,
        bytes_accessed=(M * (Din + Dout) * x.dtype.itemsize
                        + (Din * H + H * Dout) * w1.dtype.itemsize
                        + (H + Dout) * b1.dtype.itemsize))

    def _const_spec(shape, index_map, single_buffer):
        if single_buffer:
            return pl.BlockSpec(shape, index_map, pipeline_mode=pl.Buffered(1))
        return pl.BlockSpec(shape, index_map)

    def _run_resident(single_buffer):
        return pl.pallas_call(
            functools.partial(_mlp_resident_kernel, **kernel_kwargs),
            out_shape=jax.ShapeDtypeStruct((M, Dout), out_dtype),
            grid_spec=pltpu.PrefetchScalarGridSpec(
                num_scalar_prefetch=0,
                grid=(num_m,),
                in_specs=[
                    pl.BlockSpec((tm, Din), lambda i: (i, 0)),       # pipelined x
                    _const_spec((Din, H), lambda i: (0, 0), single_buffer),
                    _const_spec((1, H), lambda i: (0, 0), single_buffer),
                    _const_spec((H, Dout), lambda i: (0, 0), single_buffer),
                    _const_spec((1, Dout), lambda i: (0, 0), single_buffer),
                ],
                out_specs=pl.BlockSpec((tm, Dout), lambda i: (i, 0)),
            ),
            compiler_params=pltpu.CompilerParams(
                dimension_semantics=("parallel",),
                vmem_limit_bytes=vmem_limit,
            ),
            cost_estimate=cost,
        )(x2d, w1t, b1r, w2t, b2r)

    def _run_stream(single_buffer):
        num_h = pl.cdiv(H, th)
        return pl.pallas_call(
            functools.partial(_mlp_stream_kernel, **kernel_kwargs),
            out_shape=jax.ShapeDtypeStruct((M, Dout), out_dtype),
            grid_spec=pltpu.PrefetchScalarGridSpec(
                num_scalar_prefetch=0,
                grid=(num_m, num_h),
                in_specs=[
                    pl.BlockSpec((tm, Din), lambda i, k: (i, 0)),     # x tile
                    pl.BlockSpec((Din, th), lambda i, k: (0, k)),     # W1 tile
                    pl.BlockSpec((1, th), lambda i, k: (0, k)),       # b1 tile
                    pl.BlockSpec((th, Dout), lambda i, k: (k, 0)),    # W2 tile
                    _const_spec((1, Dout), lambda i, k: (0, 0), single_buffer),
                ],
                out_specs=pl.BlockSpec((tm, Dout), lambda i, k: (i, 0)),
                scratch_shapes=[pltpu.VMEM((tm, Dout), jnp.float32)],
            ),
            compiler_params=pltpu.CompilerParams(
                dimension_semantics=("parallel", "arbitrary"),
                vmem_limit_bytes=vmem_limit,
            ),
            cost_estimate=cost,
        )(x2d, w1t, b1r, w2t, b2r)

    runner = _run_resident if mode == "resident" else _run_stream
    try:
        out = runner(True)             # single-buffered invariant operands
    except Exception:
        out = runner(False)            # fall back to default double-buffering

    return out.reshape(*lead, Dout)


def mlp_reference(x, w1, b1, w2, b2):
    h = jnp.einsum("...d,od->...o", x, w1) + b1
    h = _gelu(h, False)
    return jnp.einsum("...d,od->...o", h, w2) + b2


if __name__ == "__main__":
    def make_case(key, d):
        k_x, k_w1, k_b1, k_w2, k_b2 = jax.random.split(key, 5)
        bound = 1.0 / math.sqrt(d)
        x = jax.random.normal(k_x, (2, 8, d), dtype=jnp.float32)
        w1 = jax.random.uniform(k_w1, (d, d), minval=-bound, maxval=bound,
                                dtype=jnp.float32)
        b1 = jax.random.uniform(k_b1, (d,), minval=-bound, maxval=bound,
                                dtype=jnp.float32)
        w2 = jax.random.uniform(k_w2, (d, d), minval=-bound, maxval=bound,
                                dtype=jnp.float32)
        b2 = jax.random.uniform(k_b2, (d,), minval=-bound, maxval=bound,
                                dtype=jnp.float32)
        return x, w1, b1, w2, b2

    # Primary small config (in_features = 32): resident-weight path.
    x, w1, b1, w2, b2 = make_case(jax.random.PRNGKey(0), 32)
    y = mlp_pallas(x, w1, b1, w2, b2)
    jax.block_until_ready(y)
    y_ref = mlp_reference(x, w1, b1, w2, b2)
    assert jnp.allclose(y, y_ref, atol=1e-5, rtol=1e-5), "resident path mismatch"

    # Exercise the weight-streaming (hidden-dim tiled) fallback path too.
    x2, w12, b12, w22, b22 = make_case(jax.random.PRNGKey(1), 256)
    y2 = mlp_pallas(x2, w12, b12, w22, b22,
                    force_mode="stream", force_hidden_tile=128)
    jax.block_until_ready(y2)
    y2_ref = mlp_reference(x2, w12, b12, w22, b22)
    assert jnp.allclose(y2, y2_ref, atol=1e-3, rtol=1e-3), "stream path mismatch"

    print("KERNEL_OK")
</pallas_src>

<mosaic_0001>
module attributes {stable_mosaic.version = 11 : i64} {
  func.func @_mlp_resident_kernel(%arg0: i32, %arg1: memref<8x32xf32, #tpu.memory_space<vmem>>, %arg2: memref<32x32xf32, #tpu.memory_space<vmem>>, %arg3: memref<1x32xf32, #tpu.memory_space<vmem>>, %arg4: memref<32x32xf32, #tpu.memory_space<vmem>>, %arg5: memref<1x32xf32, #tpu.memory_space<vmem>>, %arg6: memref<8x32xf32, #tpu.memory_space<vmem>>) attributes {dimension_semantics = [#tpu.dimension_semantics<parallel>], iteration_bounds = array<i64: 2>, scalar_prefetch = 0 : i64, scratch_operands = 0 : i64, tpu.core_type = #tpu.core_type<tc>, window_params = [{transform_indices = @transform_0, window_bounds = array<i64: 8, 32>}, {pipeline_mode = #tpu.pipeline_mode<synchronous>, transform_indices = @transform_1, window_bounds = array<i64: 32, 32>}, {pipeline_mode = #tpu.pipeline_mode<synchronous>, transform_indices = @transform_2, window_bounds = array<i64: 1, 32>}, {pipeline_mode = #tpu.pipeline_mode<synchronous>, transform_indices = @transform_3, window_bounds = array<i64: 32, 32>}, {pipeline_mode = #tpu.pipeline_mode<synchronous>, transform_indices = @transform_4, window_bounds = array<i64: 1, 32>}, {transform_indices = @transform_5, window_bounds = array<i64: 8, 32>}]} {
    %c0 = arith.constant 0 : index
    %c0_0 = arith.constant 0 : index
    %0 = vector.load %arg1[%c0, %c0_0] : memref<8x32xf32, #tpu.memory_space<vmem>>, vector<8x32xf32>
    %c0_1 = arith.constant 0 : index
    %c0_2 = arith.constant 0 : index
    %1 = vector.load %arg2[%c0_1, %c0_2] : memref<32x32xf32, #tpu.memory_space<vmem>>, vector<32x32xf32>
    %cst = arith.constant dense<0.000000e+00> : vector<8x32xf32>
    %2 = tpu.matmul %0, %1, %cst {dimension_numbers = #tpu.dot_dimension_numbers<[1], [0], [0], [1], [0, 0, 1, 1], [], []>} : vector<8x32xf32>, vector<32x32xf32>, vector<8x32xf32> -> vector<8x32xf32>
    %c0_3 = arith.constant 0 : index
    %c0_4 = arith.constant 0 : index
    %3 = vector.load %arg3[%c0_3, %c0_4] : memref<1x32xf32, #tpu.memory_space<vmem>>, vector<1x32xf32>
    %4 = vector.broadcast %3 : vector<1x32xf32> to vector<8x32xf32>
    %5 = arith.addf %2, %4 : vector<8x32xf32>
    %cst_5 = arith.constant 5.000000e-01 : f32
    %6 = vector.broadcast %cst_5 : f32 to vector<8x32xf32>
    %7 = arith.mulf %6, %5 : vector<8x32xf32>
    %cst_6 = arith.constant 1.41421354 : f32
    %8 = vector.broadcast %cst_6 : f32 to vector<8x32xf32>
    %9 = arith.divf %5, %8 : vector<8x32xf32>
    %10 = math.erf %9 : vector<8x32xf32>
    %cst_7 = arith.constant 1.000000e+00 : f32
    %11 = vector.broadcast %cst_7 : f32 to vector<8x32xf32>
    %12 = arith.addf %11, %10 : vector<8x32xf32>
    %13 = arith.mulf %7, %12 : vector<8x32xf32>
    %c0_8 = arith.constant 0 : index
    %c0_9 = arith.constant 0 : index
    %14 = vector.load %arg4[%c0_8, %c0_9] : memref<32x32xf32, #tpu.memory_space<vmem>>, vector<32x32xf32>
    %cst_10 = arith.constant dense<0.000000e+00> : vector<8x32xf32>
    %15 = tpu.matmul %13, %14, %cst_10 {dimension_numbers = #tpu.dot_dimension_numbers<[1], [0], [0], [1], [0, 0, 1, 1], [], []>} : vector<8x32xf32>, vector<32x32xf32>, vector<8x32xf32> -> vector<8x32xf32>
    %c0_11 = arith.constant 0 : index
    %c0_12 = arith.constant 0 : index
    %16 = vector.load %arg5[%c0_11, %c0_12] : memref<1x32xf32, #tpu.memory_space<vmem>>, vector<1x32xf32>
    %17 = vector.broadcast %16 : vector<1x32xf32> to vector<8x32xf32>
    %18 = arith.addf %15, %17 : vector<8x32xf32>
    %c0_13 = arith.constant 0 : index
    %c0_14 = arith.constant 0 : index
    %19 = vector.load %arg6[%c0_13, %c0_14] : memref<8x32xf32, #tpu.memory_space<vmem>>, vector<8x32xf32>
    tpu.vector_store %arg6[%c0_13, %c0_14], %18 {strides = array<i32>} : memref<8x32xf32, #tpu.memory_space<vmem>>, vector<8x32xf32>,
    return
  }
  func.func @transform_0(%arg0: i32) -> (i32, i32) {
    %c0_i32 = arith.constant 0 : i32
    %c0_i32_0 = arith.constant 0 : i32
    return %arg0, %c0_i32 : i32, i32
  }
  func.func @transform_1(%arg0: i32) -> (i32, i32) {
    %c0_i32 = arith.constant 0 : i32
    %c0_i32_0 = arith.constant 0 : i32
    %c0_i32_1 = arith.constant 0 : i32
    return %c0_i32, %c0_i32_0 : i32, i32
  }
  func.func @transform_2(%arg0: i32) -> (i32, i32) {
    %c0_i32 = arith.constant 0 : i32
    %c0_i32_0 = arith.constant 0 : i32
    %c0_i32_1 = arith.constant 0 : i32
    return %c0_i32, %c0_i32_0 : i32, i32
  }
  func.func @transform_3(%arg0: i32) -> (i32, i32) {
    %c0_i32 = arith.constant 0 : i32
    %c0_i32_0 = arith.constant 0 : i32
    %c0_i32_1 = arith.constant 0 : i32
    return %c0_i32, %c0_i32_0 : i32, i32
  }
  func.func @transform_4(%arg0: i32) -> (i32, i32) {
    %c0_i32 = arith.constant 0 : i32
    %c0_i32_0 = arith.constant 0 : i32
    %c0_i32_1 = arith.constant 0 : i32
    return %c0_i32, %c0_i32_0 : i32, i32
  }
  func.func @transform_5(%arg0: i32) -> (i32, i32) {
    %c0_i32 = arith.constant 0 : i32
    %c0_i32_0 = arith.constant 0 : i32
    return %arg0, %c0_i32 : i32, i32
  }
}

module attributes {stable_mosaic.version = 11 : i64} {
  func.func @_mlp_resident_kernel(%arg0: i32, %arg1: memref<8x32xf32, #tpu.memory_space<vmem>>, %arg2: memref<32x32xf32, #tpu.memory_space<vmem>>, %arg3: memref<1x32xf32, #tpu.memory_space<vmem>>, %arg4: memref<32x32xf32, #tpu.memory_space<vmem>>, %arg5: memref<1x32xf32, #tpu.memory_space<vmem>>, %arg6: memref<8x32xf32, #tpu.memory_space<vmem>>) attributes {dimension_semantics = [#tpu.dimension_semantics<parallel>], iteration_bounds = array<i64: 2>, scalar_prefetch = 0 : i64, scratch_operands = 0 : i64, tpu.core_type = #tpu.core_type<tc>, window_params = [{transform_indices = @transform_0, window_bounds = array<i64: 8, 32>}, {pipeline_mode = #tpu.pipeline_mode<synchronous>, transform_indices = @transform_1, window_bounds = array<i64: 32, 32>}, {pipeline_mode = #tpu.pipeline_mode<synchronous>, transform_indices = @transform_2, window_bounds = array<i64: 1, 32>}, {pipeline_mode = #tpu.pipeline_mode<synchronous>, transform_indices = @transform_3, window_bounds = array<i64: 32, 32>}, {pipeline_mode = #tpu.pipeline_mode<synchronous>, transform_indices = @transform_4, window_bounds = array<i64: 1, 32>}, {transform_indices = @transform_5, window_bounds = array<i64: 8, 32>}]} {
    %c0 = arith.constant 0 : index
    %c0_0 = arith.constant 0 : index
    %0 = vector.load %arg1[%c0, %c0_0] : memref<8x32xf32, #tpu.memory_space<vmem>>, vector<8x32xf32>
    %c0_1 = arith.constant 0 : index
    %c0_2 = arith.constant 0 : index
    %1 = vector.load %arg2[%c0_1, %c0_2] : memref<32x32xf32, #tpu.memory_space<vmem>>, vector<32x32xf32>
    %cst = arith.constant dense<0.000000e+00> : vector<8x32xf32>
    %2 = tpu.matmul %0, %1, %cst {dimension_numbers = #tpu.dot_dimension_numbers<[1], [0], [0], [1], [0, 0, 1, 1], [], []>} : vector<8x32xf32>, vector<32x32xf32>, vector<8x32xf32> -> vector<8x32xf32>
    %c0_3 = arith.constant 0 : index
    %c0_4 = arith.constant 0 : index
    %3 = vector.load %arg3[%c0_3, %c0_4] : memref<1x32xf32, #tpu.memory_space<vmem>>, vector<1x32xf32>
    %4 = vector.broadcast %3 : vector<1x32xf32> to vector<8x32xf32>
    %5 = arith.addf %2, %4 : vector<8x32xf32>
    %cst_5 = arith.constant 5.000000e-01 : f32
    %6 = vector.broadcast %cst_5 : f32 to vector<8x32xf32>
    %7 = arith.mulf %6, %5 : vector<8x32xf32>
    %cst_6 = arith.constant 1.41421354 : f32
    %8 = vector.broadcast %cst_6 : f32 to vector<8x32xf32>
    %9 = arith.divf %5, %8 : vector<8x32xf32>
    %10 = math.erf %9 : vector<8x32xf32>
    %cst_7 = arith.constant 1.000000e+00 : f32
    %11 = vector.broadcast %cst_7 : f32 to vector<8x32xf32>
    %12 = arith.addf %11, %10 : vector<8x32xf32>
    %13 = arith.mulf %7, %12 : vector<8x32xf32>
    %c0_8 = arith.constant 0 : index
    %c0_9 = arith.constant 0 : index
    %14 = vector.load %arg4[%c0_8, %c0_9] : memref<32x32xf32, #tpu.memory_space<vmem>>, vector<32x32xf32>
    %cst_10 = arith.constant dense<0.000000e+00> : vector<8x32xf32>
    %15 = tpu.matmul %13, %14, %cst_10 {dimension_numbers = #tpu.dot_dimension_numbers<[1], [0], [0], [1], [0, 0, 1, 1], [], []>} : vector<8x32xf32>, vector<32x32xf32>, vector<8x32xf32> -> vector<8x32xf32>
    %c0_11 = arith.constant 0 : index
    %c0_12 = arith.constant 0 : index
    %16 = vector.load %arg5[%c0_11, %c0_12] : memref<1x32xf32, #tpu.memory_space<vmem>>, vector<1x32xf32>
    %17 = vector.broadcast %16 : vector<1x32xf32> to vector<8x32xf32>
    %18 = arith.addf %15, %17 : vector<8x32xf32>
    %c0_13 = arith.constant 0 : index
    %c0_14 = arith.constant 0 : index
    %19 = vector.load %arg6[%c0_13, %c0_14] : memref<8x32xf32, #tpu.memory_space<vmem>>, vector<8x32xf32>
    tpu.vector_store %arg6[%c0_13, %c0_14], %18 {strides = array<i32>} : memref<8x32xf32, #tpu.memory_space<vmem>>, vector<8x32xf32>,
    return
  }
  func.func @transform_0(%arg0: i32) -> (i32, i32) {
    %c0_i32 = arith.constant 0 : i32
    %c0_i32_0 = arith.constant 0 : i32
    return %arg0, %c0_i32 : i32, i32
  }
  func.func @transform_1(%arg0: i32) -> (i32, i32) {
    %c0_i32 = arith.constant 0 : i32
    %c0_i32_0 = arith.constant 0 : i32
    %c0_i32_1 = arith.constant 0 : i32
    return %c0_i32, %c0_i32_0 : i32, i32
  }
  func.func @transform_2(%arg0: i32) -> (i32, i32) {
    %c0_i32 = arith.constant 0 : i32
    %c0_i32_0 = arith.constant 0 : i32
    %c0_i32_1 = arith.constant 0 : i32
    return %c0_i32, %c0_i32_0 : i32, i32
  }
  func.func @transform_3(%arg0: i32) -> (i32, i32) {
    %c0_i32 = arith.constant 0 : i32
    %c0_i32_0 = arith.constant 0 : i32
    %c0_i32_1 = arith.constant 0 : i32
    return %c0_i32, %c0_i32_0 : i32, i32
  }
  func.func @transform_4(%arg0: i32) -> (i32, i32) {
    %c0_i32 = arith.constant 0 : i32
    %c0_i32_0 = arith.constant 0 : i32
    %c0_i32_1 = arith.constant 0 : i32
    return %c0_i32, %c0_i32_0 : i32, i32
  }
  func.func @transform_5(%arg0: i32) -> (i32, i32) {
    %c0_i32 = arith.constant 0 : i32
    %c0_i32_0 = arith.constant 0 : i32
    return %arg0, %c0_i32 : i32, i32
  }
}

</mosaic_0001>

<bundles_post_ra>
// kernel: tpu_custom_call.1
= control target key start
LH: loop header
LB: loop body
LE: loop exit
PB: predicated region body
PF: predicated region fallthrough
CT: control target
= control target key end

     0   :  { %10 = vsyncpa [#allocation3], 0  ;;  %s1126_s0 = inlined_call_operand.hbm [shape: f32[16,32], index: 0, kind: input, shape index: {}]   ;;  %s1127_s1 = inlined_call_operand.hbm [shape: f32[32,32], index: 1, kind: input, shape index: {}]   ;;  %s1128_s2 = inlined_call_operand.vmem [shape: f32[1,32], index: 2, kind: input, shape index: {}]   ;;  %s1129_s3 = inlined_call_operand.hbm [shape: f32[32,32], index: 3, kind: input, shape index: {}]   ;;  %s1130_s4 = inlined_call_operand.vmem [shape: f32[1,32], index: 4, kind: input, shape index: {}]   ;;  %s1131_s5 = inlined_call_operand.hbm [shape: f32[16,32], index: 5, kind: output, shape index: {}]  }
   0x1   :  { %12 = vsyncpa [#allocation3 + $0x1], 0 }
   0x2   :  { %13 = vsyncpa [#allocation6], 0 }
   0x3   :  { %14 = vsyncpa [#allocation4], 0 }
   0x4   :  { %16 = vsyncpa [#allocation4 + $0x1], 0  ;;  %s884_s18 = smov 0   ;;  %s886_s19 = smov 0  }
   0x5   :  { %s888_s20 = smov 0   ;;  %s890_s21 = smov 0  }
   0x6 LB: > { %s905_s22 = sadd.s32 4294967295, %s843_s21   ;;  %s549_s23 = sadd.s32 4294967294, %s843_s21   ;;  %s843_s21 = sphi %s890_s21, %s1151_s21   ;;  %s839_s20 = sphi %s888_s20, %s1150_s20   ;;  %s835_s19 = sphi %s886_s19, %s1149_s19   ;;  %s831_s18 = sphi %s884_s18, %s1148_s18  }
   0x7   : > { %p42_p0 = scmp.ne.s32.totalorder %s835_s19, %s831_s18  ;;  %p1132_p1 = scmp.eq.s32.totalorder %s905_s22, 0 }
   0x8   : > { %p156_p3 = scmp.eq.s32.totalorder %s549_s23, 1  ;;  %p550_p5 = scmp.ge.s32.totalorder %s843_s21, 1 }
   0x9   : > { %p914_p4 = por %p1132_p1, %p42_p0  ;;  %p163_p7 = scmp.lt.s32.totalorder %s843_s21, 3 }
   0xa   : > { %p919_p6 = por %p156_p3, %p42_p0  ;;  %s845_s27 = smov [#allocation5]  }
   0xb   : > { %s1135_s24 = scalar_select %p914_p4, 1, 0 }
   0xc   : > { %s1136_s25 = scalar_select %p919_p6, 1, 0 }
   0xd   : > { %p924_p8 = pnand %p550_p5, %p163_p7  ;;  %s175_s28 = sshll.u32 %s845_s27, 4  ;;  %s928_s28 = int_to_ptr.vmem [resolvable:$true] %s175_s28 }
   0xe   : > { %s846_s30 = smov [#allocation7]   ;;  %s687_s9 = scalar_lea.hbm %s1127_s1, 512 }
   0xf   : > { %p625_p9 = pneg %p924_p8  ;;  %s191_s6 = sshll.u32 %s846_s30, 4  ;;  %s939_s6 = int_to_ptr.vmem [resolvable:$true] %s191_s6 }
  0x10   : > { %p688_p12 = scmp.ne.s32.totalorder %s1127_s1, %s687_s9  ;;  %p694_p5 = scmp.lt.u32.totalorder %s687_s9, %s1127_s1 }
  0x11   : > { %p935_p11 = pnand %p625_p9, %p1132_p1 }
  0x13   : > { %p689_p13 = pneg %p935_p11 }
  0x15   : > { %p690_p0 = pnand %p689_p13, %p688_p12 }
  0x17   : > { %p691_p3 = pneg %p690_p0 }
  0x19   : > { %p696_p7 = pnand %p694_p5, %p691_p3 }
  0x1b   : > { %699 = shalt.err (!%p696_p7)
}
  0x1c   : > { %s700_s14 = scalar_lea.vmem %s928_s28, 512  ;;  %p708_p2 = scmp.lt.s32.totalorder %s928_s28, %s928_s28 }
  0x1d   : > { %p701_p9 = scmp.ne.s32.totalorder %s928_s28, %s700_s14  ;;  %p709_p12 = scmp.lt.s32.totalorder %s700_s14, %s700_s14 }
  0x1f   : > { %p703_p10 = pnand %p701_p9, %p689_p13  ;;  %p710_p0 = por %p709_p12, %p708_p2 }
  0x21   : > { %p704_p1 = pneg %p703_p10 }
  0x23   : > { %p711_p6 = pnand %p710_p0, %p704_p1 }
  0x25   : > { %714 = shalt.err (!%p711_p6)
}
  0x26   : > { %s847_s15 = smov 128   ;;  %s848_s16 = smov 8  }
  0x27   : > { %628 = dma.hbm_to_vmem [thread:$0]  (!%p935_p11), %s1127_s1, 512, %s928_s28, [#allocation6], %s847_s15, %s847_s15, %s848_s16  }
  0x28   : > { %s715_s7 = scalar_lea.hbm %s1129_s3, 512 }
  0x29   : > { %p716_p2 = scmp.ne.s32.totalorder %s1129_s3, %s715_s7  ;;  %p722_p10 = scmp.lt.u32.totalorder %s715_s7, %s1129_s3 }
  0x2b   : > { %p718_p1 = pnand %p716_p2, %p689_p13 }
  0x2d   : > { %p719_p6 = pneg %p718_p1 }
  0x2f   : > { %p724_p3 = pnand %p722_p10, %p719_p6 }
  0x31   : > { %727 = shalt.err (!%p724_p3)
}
  0x32   : > { %s728_s28 = scalar_lea.vmem %s939_s6, 512  ;;  %p736_p12 = scmp.lt.s32.totalorder %s939_s6, %s939_s6 }
  0x33   : > { %p729_p5 = scmp.ne.s32.totalorder %s939_s6, %s728_s28  ;;  %p737_p0 = scmp.lt.s32.totalorder %s728_s28, %s728_s28 }
  0x35   : > { %p731_p7 = pnand %p729_p5, %p689_p13  ;;  %p738_p2 = por %p737_p0, %p736_p12 }
  0x37   : > { %p732_p9 = pneg %p731_p7 }
  0x39   : > { %p739_p1 = pnand %p738_p2, %p732_p9 }
  0x3b   : > { %742 = shalt.err (!%p739_p1)
}
  0x3c   : > { %631 = dma.hbm_to_vmem [thread:$0]  (!%p935_p11), %s1129_s3, 512, %s939_s6, [#allocation6], %s847_s15, %s847_s15, %s848_s16  }
  0x3d   : > { %s994_s14 = sadd.s32 1, %s843_s21   ;;  %s29_s29 = sadd.s32 1, %s839_s20 }
  0x3e   : > { %s26_s17 = ssub.s32 %s843_s21, %s994_s14  ;;  %p36_p13 = scmp.ne.s32.totalorder %s839_s20, %s835_s19 }
  0x3f   : > { %p27_p6 = scmp.eq.s32.totalorder %s26_s17, 0  ;;  %p37_p10 = scmp.eq.s32.totalorder %s843_s21, 0 }
  0x40   : > { %p1139_p3 = scmp.eq.s32.totalorder %s905_s22, 1  ;;  %p642_p7 = scmp.lt.s32.totalorder %s843_s21, 2 }
  0x41   : > { %s1010_s27 = scalar_select %p27_p6, %s839_s20, %s29_s29  }
  0x42   : > { %p1004_p5 = por %p1139_p3, %p36_p13  ;;  %p38_p9 = por %p37_p10, %p36_p13 }
  0x43   : > { %s208_s30 = sand.u32 1, %s839_s20   ;;  %s555_s6 = sshll.u32 %s843_s21, 7 }
  0x44   : > { %s1140_s23 = scalar_select %p1004_p5, 1, 0 }
  0x45   : > { %s554_s7 = sshll.u32 %s208_s30, 3  ;;  %s1017_s8 = scalar_lea.hbm %s1126_s0, %s555_s6 }
  0x46   : > { %s212_s9 = scalar_lea.vmem [#allocation2], %s554_s7  ;;  %p1021_p11 = pnand %p642_p7, %p38_p9 }
  0x47   : > { %s219_s10 = sshll.u32 %s212_s9, 4  ;;  %s209_s28 = scalar_lea.sflag [#allocation3], %s208_s30  ;;  %s1019_s10 = int_to_ptr.vmem [resolvable:$true] %s219_s10 }
  0x48   : > { %s743_s12 = scalar_lea.hbm %s1017_s8, 128  ;;  %p745_p0 = pneg %p1021_p11 }
  0x49   : > { %p744_p12 = scmp.ne.s32.totalorder %s1017_s8, %s743_s12  ;;  %s748_s17 = scalar_lea.hbm %s1126_s0, 256 }
  0x4a   : > { %p749_p13 = scmp.lt.u32.totalorder %s1017_s8, %s1126_s0  ;;  %p750_p6 = scmp.lt.u32.totalorder %s748_s17, %s743_s12 }
  0x4b   : > { %p746_p2 = pnand %p745_p0, %p744_p12  ;;  %p752_p3 = scmp.lt.u32.totalorder %s743_s12, %s1017_s8 }
  0x4c   : > { %p751_p10 = por %p750_p6, %p749_p13 }
  0x4d   : > { %p747_p1 = pneg %p746_p2 }
  0x4e   : > { %p753_p7 = por %p752_p3, %p751_p10 }
  0x50   : > { %p754_p9 = pnand %p753_p7, %p747_p1 }
  0x52   : > { %757 = shalt.err (!%p754_p9)
}
  0x53   : > { %s758_s30 = scalar_lea.vmem %s1019_s10, 128  ;;  %s849_s15 = smov [#allocation2]  }
  0x54   : > { %p759_p12 = scmp.ne.s32.totalorder %s1019_s10, %s758_s30  ;;  %s763_s16 = sshll.u32 %s849_s15, 4  ;;  %s764_s16 = int_to_ptr.vmem [resolvable:$false] %s763_s16 }
  0x55   : > { %s765_s9 = scalar_lea.vmem %s764_s16, 256  ;;  %p766_p4 = scmp.lt.s32.totalorder %s1019_s10, %s764_s16 }
  0x56   : > { %p761_p2 = pnand %p759_p12, %p745_p0  ;;  %p767_p13 = scmp.lt.s32.totalorder %s765_s9, %s758_s30 }
  0x58   : > { %p762_p5 = pneg %p761_p2  ;;  %p768_p6 = por %p767_p13, %p766_p4 }
  0x5a   : > { %p769_p10 = pnand %p768_p6, %p762_p5 }
  0x5c   : > { %772 = shalt.err (!%p769_p10)
}
  0x5d   : > { %635 = dma.hbm_to_vmem [thread:$0]  (!%p1021_p11), %s1017_s8, 128, %s1019_s10, %s209_s28  }
  0x5e   : > { %228 = sbr.rel (%p924_p8) target bundleno = 574 (0x23e), region = 40  ;;  %s1053_s12 = sand.u32 (!%p924_p8), 1, %s835_s19  }
  0x5f   : > { %s557_s13 = sshll.u32 (!%p924_p8), %s1053_s12, 3  ;;  %s231_s29 = scalar_lea.sflag (!%p924_p8), [#allocation3], %s1053_s12 }
  0x60   : > { %s234_s17 = scalar_lea.vmem (!%p924_p8), [#allocation2], %s557_s13  ;;  %p1142_p4 = scmp.ne.s32.totalorder (!%p924_p8), %s1135_s24, 0 }
  0x65   : > { %818 = dma.done.wait (%p1142_p4), %s231_s29, 128  }
  0x66   : > { %820 = vsyncadd (%p1142_p4), %s231_s29, 4294967168  ;;  %p1143_p5 = scmp.eq.s32.totalorder %s905_s22, 0 }
  0x68   : > { %822 = dma.done.wait (%p1143_p5), [#allocation6], 1024   ;;  %p1144_p8 = pmov %p1143_p5 }
  0x69   : > { %v850_v0 = vmov 0.0|0.0   ;;  %vm851_vm0 = vmmov 0   ;;  %v852_v1 = vmov 0.0   ;;  %v270_v2 = vld [vmem:[#allocation5] sm:$0xff]  ;;  %v271_v3 = vld [vmem:[#allocation5 + $0x8] sm:$0xff]  ;;  %v272_v4 = vld [vmem:[#allocation5 + $0x10] sm:$0xff] }
  0x6a   : > { %824 = vsyncadd (%p1144_p8), [#allocation6], 4294966272  ;;  %601 = vmatprep.subr.bf16.mxu0 %v850_v0  ;;  %587 = vmatprep.mubr.msk.f32.mxu0 %vm851_vm0, %v852_v1  ;;  %v602_v5 = vpack.c.bf16 %v271_v3, %v270_v2  ;;  %v273_v6 = vld [vmem:[#allocation5 + $0x18] sm:$0xff]  ;;  %vm281_vm1 = vcmask 261120   ;;  %v361_v9 = vld [vmem:[#allocation7] sm:$0xff]  ;;  %s566_s11 = sshll.u32 %s905_s22, 7 }
  0x6b   : > { %607 = vmatprep.subr.bf16.mxu1 %v850_v0  ;;  %598 = vmatprep.mubr.msk.f32.mxu1 %vm851_vm0, %v852_v1  ;;  %v605_v7 = vpack.c.bf16 %v273_v6, %v272_v4  ;;  %v269_v8 = vld [vmem:[%s234_s17] sm:$0xff]  ;;  %v362_v10 = vld [vmem:[#allocation7 + $0x8] sm:$0xff]  ;;  %s268_s28 = scalar_lea.vmem [#allocation8], %s557_s13  ;;  %s1081_s15 = scalar_lea.hbm %s1131_s5, %s566_s11 }
  0x6c   : > { %603 = vmatpush3.bf16.msra.mxu0 %v602_v5  ;;  %v608_v11 = vpack.c.bf16 %v362_v10, %v361_v9  ;;  %v363_v12 = vld [vmem:[#allocation7 + $0x10] sm:$0xff]  ;;  %v364_v13 = vld [vmem:[#allocation7 + $0x18] sm:$0xff]  ;;  %s460_s7 = sshll.u32 %s268_s28, 4  ;;  %s447_s16 = scalar_lea.sflag [#allocation4], %s1053_s12  ;;  %s1083_s7 = int_to_ptr.vmem [resolvable:$true] %s460_s7 }
  0x6d   : > { %604 = vmatprep.subr.bf16.mxu0 %v850_v0  ;;  %v611_v14 = vpack.c.bf16 %v364_v13, %v363_v12  ;;  %v561_v15 = vld [vmem:[%s1128_s2] ss:$0 sm:$0xff]  ;;  %s773_s22 = scalar_lea.vmem %s1083_s7, 128  ;;  %p1145_p0 = scmp.ne.s32.totalorder %s1140_s23, 0 }
  0x6e   : > { %609 = vmatpush3.bf16.msra.mxu1 %v608_v11  ;;  %v563_v24 = vld [vmem:[%s1130_s4] ss:$0 sm:$0xff]  ;;  %p774_p11 = scmp.ne.s32.totalorder %s1083_s7, %s773_s22  ;;  %s853_s9 = smov [#allocation8]  }
  0x6f   : > { %610 = vmatprep.subr.bf16.mxu1 %v850_v0  ;;  %s777_s13 = sshll.u32 %s853_s9, 4  ;;  %s778_s13 = int_to_ptr.vmem [resolvable:$false] %s777_s13 }
  0x70   : > { %606 = vmatpush3.bf16.msra.mxu0 %v605_v7  ;;  %p775_p1 = pnand %p774_p11, %p1145_p0  ;;  %s779_s29 = scalar_lea.vmem %s778_s13, 256 }
  0x71   : > { %p780_p7 = scmp.lt.s32.totalorder %s1083_s7, %s778_s13  ;;  %p781_p9 = scmp.lt.s32.totalorder %s779_s29, %s773_s22 }
  0x72   : > { %612 = vmatpush3.bf16.msra.mxu1 %v611_v14  ;;  %p776_p3 = pneg %p775_p1 }
  0x73   : > { %588 = vmatmul.mubr.msk.f32.vlgmr.msra.gmra.mrb[0].mxu0 %vm281_vm1, %v269_v8  ;;  %p782_p12 = por %p781_p9, %p780_p7 }
  0x75   : > { %p783_p2 = pnand %p782_p12, %p776_p3 }
 0x146   : > { %v351_v16 = vpop.f32.mrb[0].mxu0 }
 0x147   : > { %v352_v17 = vadd.f32 %v561_v15, %v351_v16  ;;  %v589_v18 = vpop.f32.mrb[1].mxu0 }
 0x149   : > { %v357_v19 = vmul.f32 0.70710677, %v352_v17  ;;  %v355_v21 = vmul.f32 0.5, %v352_v17 }
 0x14b   : > { %685 = verf.f32 %v357_v19 }
 0x155   : > { %v686_v20 = vpop.eup %685 }
 0x156   : > { %v359_v22 = vadd.f32 1.0, %v686_v20 }
 0x158   : > { %v360_v23 = vmul.f32 %v359_v22, %v355_v21 }
 0x15a   : > { %599 = vmatmul.mubr.msk.f32.vlgmr.msra.gmra.mrb[0].mxu1 %vm281_vm1, %v360_v23 }
 0x22d   : > { %v441_v25 = vpop.f32.mrb[0].mxu1 }
 0x22e   : > { %v442_v26 = vadd.f32 %v563_v24, %v441_v25  ;;  %v600_v27 = vpop.f32.mrb[1].mxu1 }
 0x230   : > { %445 = vst.msk [vmem:[%s268_s28] sm:$0xff] %vm281_vm1, %v442_v26 }
 0x231   : > { %786 = shalt.err (!%p783_p2)
}
 0x232   : > { %s787_s12 = scalar_lea.hbm %s1081_s15, 128  ;;  %s791_s26 = scalar_lea.hbm %s1131_s5, 256 }
 0x233   : > { %p788_p13 = scmp.ne.s32.totalorder %s1081_s15, %s787_s12  ;;  %p792_p4 = scmp.lt.u32.totalorder %s1081_s15, %s1131_s5 }
 0x234   : > { %p793_p5 = scmp.lt.u32.totalorder %s791_s26, %s787_s12  ;;  %p795_p11 = scmp.lt.u32.totalorder %s787_s12, %s1081_s15 }
 0x235   : > { %p789_p6 = pnand %p788_p13, %p1145_p0 }
 0x236   : > { %p794_p8 = por %p793_p5, %p792_p4 }
 0x237   : > { %p790_p10 = pneg %p789_p6 }
 0x238   : > { %p796_p1 = por %p795_p11, %p794_p8 }
 0x23a   : > { %p797_p3 = pnand %p796_p1, %p790_p10 }
 0x23c   : > { %800 = shalt.err (!%p797_p3)
}
 0x23d   : > { %623 = dma.vmem_to_hbm [thread:$0]  (%p1145_p0), %s1083_s7, 128, %s1081_s15, %s447_s16  }
 0x23e PF: > { %s472_s11 = sand.u32 1, %s831_s18   ;;  %p1146_p7 = scmp.ne.s32.totalorder %s1136_s25, 0 }
 0x23f   : > { %p1147_p9 = scmp.ge.s32.totalorder %s843_s21, 2  ;;  %s473_s28 = scalar_lea.sflag [#allocation4], %s472_s11 }
 0x241   : > { %p637_p12 = pnand %p1147_p9, %p1146_p7 }
 0x243   : > { %826 = dma.done.wait (!%p637_p12), %s473_s28, 128  }
 0x244   : > { %828 = vsyncadd (!%p637_p12), %s473_s28, 4294967168  ;;  %p19_p2 = scmp.ge.s32.totalorder %s994_s14, 4   ;;  %s1148_s18 = smov %s835_s19 }
 0x245   : > { %s1149_s19 = smov %s839_s20  ;;  %s1150_s20 = smov %s1010_s27 }
 0x246   : > { %s1151_s21 = smov %s994_s14  ;;  %21 = sbr.rel (!%p19_p2) target bundleno = 6 (0x6), region = 93 }
 0x24d   :  { %478 = vsyncpa [#allocation3], 1 }
 0x24e   :  { %480 = vsyncpa [#allocation3 + $0x1], 1 }
 0x24f   :  { %481 = vsyncpa [#allocation6], 1 }
 0x250   :  { %482 = vsyncpa [#allocation4], 1 }
 0x251   :  { %484 = vsyncpa [#allocation4 + $0x1], 1 }

// kernel: tpu_custom_call.1
= control target key start
LH: loop header
LB: loop body
LE: loop exit
PB: predicated region body
PF: predicated region fallthrough
CT: control target
= control target key end

     0   :  { %10 = vsyncpa [#allocation3], 0  ;;  %s1126_s0 = inlined_call_operand.hbm [shape: f32[16,32], index: 0, kind: input, shape index: {}]   ;;  %s1127_s1 = inlined_call_operand.hbm [shape: f32[32,32], index: 1, kind: input, shape index: {}]   ;;  %s1128_s2 = inlined_call_operand.vmem [shape: f32[1,32], index: 2, kind: input, shape index: {}]   ;;  %s1129_s3 = inlined_call_operand.hbm [shape: f32[32,32], index: 3, kind: input, shape index: {}]   ;;  %s1130_s4 = inlined_call_operand.vmem [shape: f32[1,32], index: 4, kind: input, shape index: {}]   ;;  %s1131_s5 = inlined_call_operand.hbm [shape: f32[16,32], index: 5, kind: output, shape index: {}]  }
   0x1   :  { %12 = vsyncpa [#allocation3 + $0x1], 0 }
   0x2   :  { %13 = vsyncpa [#allocation6], 0 }
   0x3   :  { %14 = vsyncpa [#allocation4], 0 }
   0x4   :  { %16 = vsyncpa [#allocation4 + $0x1], 0  ;;  %s884_s18 = smov 0   ;;  %s886_s19 = smov 0  }
   0x5   :  { %s888_s20 = smov 0   ;;  %s890_s21 = smov 0  }
   0x6 LB: > { %s905_s22 = sadd.s32 4294967295, %s843_s21   ;;  %s549_s23 = sadd.s32 4294967294, %s843_s21   ;;  %s843_s21 = sphi %s890_s21, %s1151_s21   ;;  %s839_s20 = sphi %s888_s20, %s1150_s20   ;;  %s835_s19 = sphi %s886_s19, %s1149_s19   ;;  %s831_s18 = sphi %s884_s18, %s1148_s18  }
   0x7   : > { %p42_p0 = scmp.ne.s32.totalorder %s835_s19, %s831_s18  ;;  %p1132_p1 = scmp.eq.s32.totalorder %s905_s22, 0 }
   0x8   : > { %p156_p3 = scmp.eq.s32.totalorder %s549_s23, 1  ;;  %p550_p5 = scmp.ge.s32.totalorder %s843_s21, 1 }
   0x9   : > { %p914_p4 = por %p1132_p1, %p42_p0  ;;  %p163_p7 = scmp.lt.s32.totalorder %s843_s21, 3 }
   0xa   : > { %p919_p6 = por %p156_p3, %p42_p0  ;;  %s845_s27 = smov [#allocation5]  }
   0xb   : > { %s1135_s24 = scalar_select %p914_p4, 1, 0 }
   0xc   : > { %s1136_s25 = scalar_select %p919_p6, 1, 0 }
   0xd   : > { %p924_p8 = pnand %p550_p5, %p163_p7  ;;  %s175_s28 = sshll.u32 %s845_s27, 4  ;;  %s928_s28 = int_to_ptr.vmem [resolvable:$true] %s175_s28 }
   0xe   : > { %s846_s30 = smov [#allocation7]   ;;  %s687_s9 = scalar_lea.hbm %s1127_s1, 512 }
   0xf   : > { %p625_p9 = pneg %p924_p8  ;;  %s191_s6 = sshll.u32 %s846_s30, 4  ;;  %s939_s6 = int_to_ptr.vmem [resolvable:$true] %s191_s6 }
  0x10   : > { %p688_p12 = scmp.ne.s32.totalorder %s1127_s1, %s687_s9  ;;  %p694_p5 = scmp.lt.u32.totalorder %s687_s9, %s1127_s1 }
  0x11   : > { %p935_p11 = pnand %p625_p9, %p1132_p1 }
  0x13   : > { %p689_p13 = pneg %p935_p11 }
  0x15   : > { %p690_p0 = pnand %p689_p13, %p688_p12 }
  0x17   : > { %p691_p3 = pneg %p690_p0 }
  0x19   : > { %p696_p7 = pnand %p694_p5, %p691_p3 }
  0x1b   : > { %699 = shalt.err (!%p696_p7)
}
  0x1c   : > { %s700_s14 = scalar_lea.vmem %s928_s28, 512  ;;  %p708_p2 = scmp.lt.s32.totalorder %s928_s28, %s928_s28 }
  0x1d   : > { %p701_p9 = scmp.ne.s32.totalorder %s928_s28, %s700_s14  ;;  %p709_p12 = scmp.lt.s32.totalorder %s700_s14, %s700_s14 }
  0x1f   : > { %p703_p10 = pnand %p701_p9, %p689_p13  ;;  %p710_p0 = por %p709_p12, %p708_p2 }
  0x21   : > { %p704_p1 = pneg %p703_p10 }
  0x23   : > { %p711_p6 = pnand %p710_p0, %p704_p1 }
  0x25   : > { %714 = shalt.err (!%p711_p6)
}
  0x26   : > { %s847_s15 = smov 128   ;;  %s848_s16 = smov 8  }
  0x27   : > { %628 = dma.hbm_to_vmem [thread:$0]  (!%p935_p11), %s1127_s1, 512, %s928_s28, [#allocation6], %s847_s15, %s847_s15, %s848_s16  }
  0x28   : > { %s715_s7 = scalar_lea.hbm %s1129_s3, 512 }
  0x29   : > { %p716_p2 = scmp.ne.s32.totalorder %s1129_s3, %s715_s7  ;;  %p722_p10 = scmp.lt.u32.totalorder %s715_s7, %s1129_s3 }
  0x2b   : > { %p718_p1 = pnand %p716_p2, %p689_p13 }
  0x2d   : > { %p719_p6 = pneg %p718_p1 }
  0x2f   : > { %p724_p3 = pnand %p722_p10, %p719_p6 }
  0x31   : > { %727 = shalt.err (!%p724_p3)
}
  0x32   : > { %s728_s28 = scalar_lea.vmem %s939_s6, 512  ;;  %p736_p12 = scmp.lt.s32.totalorder %s939_s6, %s939_s6 }
  0x33   : > { %p729_p5 = scmp.ne.s32.totalorder %s939_s6, %s728_s28  ;;  %p737_p0 = scmp.lt.s32.totalorder %s728_s28, %s728_s28 }
  0x35   : > { %p731_p7 = pnand %p729_p5, %p689_p13  ;;  %p738_p2 = por %p737_p0, %p736_p12 }
  0x37   : > { %p732_p9 = pneg %p731_p7 }
  0x39   : > { %p739_p1 = pnand %p738_p2, %p732_p9 }
  0x3b   : > { %742 = shalt.err (!%p739_p1)
}
  0x3c   : > { %631 = dma.hbm_to_vmem [thread:$0]  (!%p935_p11), %s1129_s3, 512, %s939_s6, [#allocation6], %s847_s15, %s847_s15, %s848_s16  }
  0x3d   : > { %s994_s14 = sadd.s32 1, %s843_s21   ;;  %s29_s29 = sadd.s32 1, %s839_s20 }
  0x3e   : > { %s26_s17 = ssub.s32 %s843_s21, %s994_s14  ;;  %p36_p13 = scmp.ne.s32.totalorder %s839_s20, %s835_s19 }
  0x3f   : > { %p27_p6 = scmp.eq.s32.totalorder %s26_s17, 0  ;;  %p37_p10 = scmp.eq.s32.totalorder %s843_s21, 0 }
  0x40   : > { %p1139_p3 = scmp.eq.s32.totalorder %s905_s22, 1  ;;  %p642_p7 = scmp.lt.s32.totalorder %s843_s21, 2 }
  0x41   : > { %s1010_s27 = scalar_select %p27_p6, %s839_s20, %s29_s29  }
  0x42   : > { %p1004_p5 = por %p1139_p3, %p36_p13  ;;  %p38_p9 = por %p37_p10, %p36_p13 }
  0x43   : > { %s208_s30 = sand.u32 1, %s839_s20   ;;  %s555_s6 = sshll.u32 %s843_s21, 7 }
  0x44   : > { %s1140_s23 = scalar_select %p1004_p5, 1, 0 }
  0x45   : > { %s554_s7 = sshll.u32 %s208_s30, 3  ;;  %s1017_s8 = scalar_lea.hbm %s1126_s0, %s555_s6 }
  0x46   : > { %s212_s9 = scalar_lea.vmem [#allocation2], %s554_s7  ;;  %p1021_p11 = pnand %p642_p7, %p38_p9 }
  0x47   : > { %s219_s10 = sshll.u32 %s212_s9, 4  ;;  %s209_s28 = scalar_lea.sflag [#allocation3], %s208_s30  ;;  %s1019_s10 = int_to_ptr.vmem [resolvable:$true] %s219_s10 }
  0x48   : > { %s743_s12 = scalar_lea.hbm %s1017_s8, 128  ;;  %p745_p0 = pneg %p1021_p11 }
  0x49   : > { %p744_p12 = scmp.ne.s32.totalorder %s1017_s8, %s743_s12  ;;  %s748_s17 = scalar_lea.hbm %s1126_s0, 256 }
  0x4a   : > { %p749_p13 = scmp.lt.u32.totalorder %s1017_s8, %s1126_s0  ;;  %p750_p6 = scmp.lt.u32.totalorder %s748_s17, %s743_s12 }
  0x4b   : > { %p746_p2 = pnand %p745_p0, %p744_p12  ;;  %p752_p3 = scmp.lt.u32.totalorder %s743_s12, %s1017_s8 }
  0x4c   : > { %p751_p10 = por %p750_p6, %p749_p13 }
  0x4d   : > { %p747_p1 = pneg %p746_p2 }
  0x4e   : > { %p753_p7 = por %p752_p3, %p751_p10 }
  0x50   : > { %p754_p9 = pnand %p753_p7, %p747_p1 }
  0x52   : > { %757 = shalt.err (!%p754_p9)
}
  0x53   : > { %s758_s30 = scalar_lea.vmem %s1019_s10, 128  ;;  %s849_s15 = smov [#allocation2]  }
  0x54   : > { %p759_p12 = scmp.ne.s32.totalorder %s1019_s10, %s758_s30  ;;  %s763_s16 = sshll.u32 %s849_s15, 4  ;;  %s764_s16 = int_to_ptr.vmem [resolvable:$false] %s763_s16 }
  0x55   : > { %s765_s9 = scalar_lea.vmem %s764_s16, 256  ;;  %p766_p4 = scmp.lt.s32.totalorder %s1019_s10, %s764_s16 }
  0x56   : > { %p761_p2 = pnand %p759_p12, %p745_p0  ;;  %p767_p13 = scmp.lt.s32.totalorder %s765_s9, %s758_s30 }
  0x58   : > { %p762_p5 = pneg %p761_p2  ;;  %p768_p6 = por %p767_p13, %p766_p4 }
  0x5a   : > { %p769_p10 = pnand %p768_p6, %p762_p5 }
  0x5c   : > { %772 = shalt.err (!%p769_p10)
}
  0x5d   : > { %635 = dma.hbm_to_vmem [thread:$0]  (!%p1021_p11), %s1017_s8, 128, %s1019_s10, %s209_s28  }
  0x5e   : > { %228 = sbr.rel (%p924_p8) target bundleno = 574 (0x23e), region = 40  ;;  %s1053_s12 = sand.u32 (!%p924_p8), 1, %s835_s19  }
  0x5f   : > { %s557_s13 = sshll.u32 (!%p924_p8), %s1053_s12, 3  ;;  %s231_s29 = scalar_lea.sflag (!%p924_p8), [#allocation3], %s1053_s12 }
  0x60   : > { %s234_s17 = scalar_lea.vmem (!%p924_p8), [#allocation2], %s557_s13  ;;  %p1142_p4 = scmp.ne.s32.totalorder (!%p924_p8), %s1135_s24, 0 }
  0x65   : > { %818 = dma.done.wait (%p1142_p4), %s231_s29, 128  }
  0x66   : > { %820 = vsyncadd (%p1142_p4), %s231_s29, 4294967168  ;;  %p1143_p5 = scmp.eq.s32.totalorder %s905_s22, 0 }
  0x68   : > { %822 = dma.done.wait (%p1143_p5), [#allocation6], 1024   ;;  %p1144_p8 = pmov %p1143_p5 }
  0x69   : > { %v850_v0 = vmov 0.0|0.0   ;;  %vm851_vm0 = vmmov 0   ;;  %v852_v1 = vmov 0.0   ;;  %v270_v2 = vld [vmem:[#allocation5] sm:$0xff]  ;;  %v271_v3 = vld [vmem:[#allocation5 + $0x8] sm:$0xff]  ;;  %v272_v4 = vld [vmem:[#allocation5 + $0x10] sm:$0xff] }
  0x6a   : > { %824 = vsyncadd (%p1144_p8), [#allocation6], 4294966272  ;;  %601 = vmatprep.subr.bf16.mxu0 %v850_v0  ;;  %587 = vmatprep.mubr.msk.f32.mxu0 %vm851_vm0, %v852_v1  ;;  %v602_v5 = vpack.c.bf16 %v271_v3, %v270_v2  ;;  %v273_v6 = vld [vmem:[#allocation5 + $0x18] sm:$0xff]  ;;  %vm281_vm1 = vcmask 261120   ;;  %v361_v9 = vld [vmem:[#allocation7] sm:$0xff]  ;;  %s566_s11 = sshll.u32 %s905_s22, 7 }
  0x6b   : > { %607 = vmatprep.subr.bf16.mxu1 %v850_v0  ;;  %598 = vmatprep.mubr.msk.f32.mxu1 %vm851_vm0, %v852_v1  ;;  %v605_v7 = vpack.c.bf16 %v273_v6, %v272_v4  ;;  %v269_v8 = vld [vmem:[%s234_s17] sm:$0xff]  ;;  %v362_v10 = vld [vmem:[#allocation7 + $0x8] sm:$0xff]  ;;  %s268_s28 = scalar_lea.vmem [#allocation8], %s557_s13  ;;  %s1081_s15 = scalar_lea.hbm %s1131_s5, %s566_s11 }
  0x6c   : > { %603 = vmatpush3.bf16.msra.mxu0 %v602_v5  ;;  %v608_v11 = vpack.c.bf16 %v362_v10, %v361_v9  ;;  %v363_v12 = vld [vmem:[#allocation7 + $0x10] sm:$0xff]  ;;  %v364_v13 = vld [vmem:[#allocation7 + $0x18] sm:$0xff]  ;;  %s460_s7 = sshll.u32 %s268_s28, 4  ;;  %s447_s16 = scalar_lea.sflag [#allocation4], %s1053_s12  ;;  %s1083_s7 = int_to_ptr.vmem [resolvable:$true] %s460_s7 }
  0x6d   : > { %604 = vmatprep.subr.bf16.mxu0 %v850_v0  ;;  %v611_v14 = vpack.c.bf16 %v364_v13, %v363_v12  ;;  %v561_v15 = vld [vmem:[%s1128_s2] ss:$0 sm:$0xff]  ;;  %s773_s22 = scalar_lea.vmem %s1083_s7, 128  ;;  %p1145_p0 = scmp.ne.s32.totalorder %s1140_s23, 0 }
  0x6e   : > { %609 = vmatpush3.bf16.msra.mxu1 %v608_v11  ;;  %v563_v24 = vld [vmem:[%s1130_s4] ss:$0 sm:$0xff]  ;;  %p774_p11 = scmp.ne.s32.totalorder %s1083_s7, %s773_s22  ;;  %s853_s9 = smov [#allocation8]  }
  0x6f   : > { %610 = vmatprep.subr.bf16.mxu1 %v850_v0  ;;  %s777_s13 = sshll.u32 %s853_s9, 4  ;;  %s778_s13 = int_to_ptr.vmem [resolvable:$false] %s777_s13 }
  0x70   : > { %606 = vmatpush3.bf16.msra.mxu0 %v605_v7  ;;  %p775_p1 = pnand %p774_p11, %p1145_p0  ;;  %s779_s29 = scalar_lea.vmem %s778_s13, 256 }
  0x71   : > { %p780_p7 = scmp.lt.s32.totalorder %s1083_s7, %s778_s13  ;;  %p781_p9 = scmp.lt.s32.totalorder %s779_s29, %s773_s22 }
  0x72   : > { %612 = vmatpush3.bf16.msra.mxu1 %v611_v14  ;;  %p776_p3 = pneg %p775_p1 }
  0x73   : > { %588 = vmatmul.mubr.msk.f32.vlgmr.msra.gmra.mrb[0].mxu0 %vm281_vm1, %v269_v8  ;;  %p782_p12 = por %p781_p9, %p780_p7 }
  0x75   : > { %p783_p2 = pnand %p782_p12, %p776_p3 }
 0x146   : > { %v351_v16 = vpop.f32.mrb[0].mxu0 }
 0x147   : > { %v352_v17 = vadd.f32 %v561_v15, %v351_v16  ;;  %v589_v18 = vpop.f32.mrb[1].mxu0 }
 0x149   : > { %v357_v19 = vmul.f32 0.70710677, %v352_v17  ;;  %v355_v21 = vmul.f32 0.5, %v352_v17 }
 0x14b   : > { %685 = verf.f32 %v357_v19 }
 0x155   : > { %v686_v20 = vpop.eup %685 }
 0x156   : > { %v359_v22 = vadd.f32 1.0, %v686_v20 }
 0x158   : > { %v360_v23 = vmul.f32 %v359_v22, %v355_v21 }
 0x15a   : > { %599 = vmatmul.mubr.msk.f32.vlgmr.msra.gmra.mrb[0].mxu1 %vm281_vm1, %v360_v23 }
 0x22d   : > { %v441_v25 = vpop.f32.mrb[0].mxu1 }
 0x22e   : > { %v442_v26 = vadd.f32 %v563_v24, %v441_v25  ;;  %v600_v27 = vpop.f32.mrb[1].mxu1 }
 0x230   : > { %445 = vst.msk [vmem:[%s268_s28] sm:$0xff] %vm281_vm1, %v442_v26 }
 0x231   : > { %786 = shalt.err (!%p783_p2)
}
 0x232   : > { %s787_s12 = scalar_lea.hbm %s1081_s15, 128  ;;  %s791_s26 = scalar_lea.hbm %s1131_s5, 256 }
 0x233   : > { %p788_p13 = scmp.ne.s32.totalorder %s1081_s15, %s787_s12  ;;  %p792_p4 = scmp.lt.u32.totalorder %s1081_s15, %s1131_s5 }
 0x234   : > { %p793_p5 = scmp.lt.u32.totalorder %s791_s26, %s787_s12  ;;  %p795_p11 = scmp.lt.u32.totalorder %s787_s12, %s1081_s15 }
 0x235   : > { %p789_p6 = pnand %p788_p13, %p1145_p0 }
 0x236   : > { %p794_p8 = por %p793_p5, %p792_p4 }
 0x237   : > { %p790_p10 = pneg %p789_p6 }
 0x238   : > { %p796_p1 = por %p795_p11, %p794_p8 }
 0x23a   : > { %p797_p3 = pnand %p796_p1, %p790_p10 }
 0x23c   : > { %800 = shalt.err (!%p797_p3)
}
 0x23d   : > { %623 = dma.vmem_to_hbm [thread:$0]  (%p1145_p0), %s1083_s7, 128, %s1081_s15, %s447_s16  }
 0x23e PF: > { %s472_s11 = sand.u32 1, %s831_s18   ;;  %p1146_p7 = scmp.ne.s32.totalorder %s1136_s25, 0 }
 0x23f   : > { %p1147_p9 = scmp.ge.s32.totalorder %s843_s21, 2  ;;  %s473_s28 = scalar_lea.sflag [#allocation4], %s472_s11 }
 0x241   : > { %p637_p12 = pnand %p1147_p9, %p1146_p7 }
 0x243   : > { %826 = dma.done.wait (!%p637_p12), %s473_s28, 128  }
 0x244   : > { %828 = vsyncadd (!%p637_p12), %s473_s28, 4294967168  ;;  %p19_p2 = scmp.ge.s32.totalorder %s994_s14, 4   ;;  %s1148_s18 = smov %s835_s19 }
 0x245   : > { %s1149_s19 = smov %s839_s20  ;;  %s1150_s20 = smov %s1010_s27 }
 0x246   : > { %s1151_s21 = smov %s994_s14  ;;  %21 = sbr.rel (!%p19_p2) target bundleno = 6 (0x6), region = 93 }
 0x24d   :  { %478 = vsyncpa [#allocation3], 1 }
 0x24e   :  { %480 = vsyncpa [#allocation3 + $0x1], 1 }
 0x24f   :  { %481 = vsyncpa [#allocation6], 1 }
 0x250   :  { %482 = vsyncpa [#allocation4], 1 }
 0x251   :  { %484 = vsyncpa [#allocation4 + $0x1], 1 }

</bundles_post_ra>
